<compile_context>
chip_gen: v5e
topology: v5e:2x2
jax: 0.10.0
libtpu: 0.0.40
codegen_flags: <defaults>
</compile_context>

<pallas_src>
import functools
import math

import jax
import jax.numpy as jnp
from jax.experimental import pallas as pl
from jax.experimental.pallas import tpu as pltpu


def _const_index(ndim, *_):
    # constant block across the whole grid (weights / biases / norm params)
    return (0,) * ndim


def _encoder_kernel(nhead, head_dim, seq_len, d_model, eps, compute_dtype,
                    x_ref,
                    wqkv, bqkv, wo_h, bo,
                    g1, be1, w1f, b1f, w2f, b2f, g2, be2,
                    bns, bnh,
                    o_ref):
    D, H, hd, S = d_model, nhead, head_dim, seq_len
    cdt = compute_dtype

    x_flat = x_ref[...]
    rows = x_flat.size // D            # static: bb * S rows in this slab
    bb = rows // S

    # Lane-dense input slab -> logical (rows, D) view (identity reshape when
    # the wrapper passed (rows, D) directly).
    x_any = x_flat.reshape(rows, D)
    xc = x_any.astype(cdt)             # MXU operand dtype, cast once
    x = x_any.astype(jnp.float32)      # residual / LayerNorm path stays f32

    # ---- fused Q|K|V projection: one GEMM with N = 3*D ---------------------
    qkv = jnp.dot(xc, wqkv[...], preferred_element_type=jnp.float32) + bqkv[...]

    scale = 1.0 / math.sqrt(hd)
    q3 = (qkv[:, 0 * D:1 * D] * scale).astype(cdt).reshape(bb, S, D)
    k3 = qkv[:, 1 * D:2 * D].astype(cdt).reshape(bb, S, D)
    v3 = qkv[:, 2 * D:3 * D].astype(cdt).reshape(bb, S, D)

    # ---- multi-head self-attention, batched over (head, batch) -------------
    # Head split = one static lane slice per head stacked along the untiled
    # leading axis (head-major); scores / softmax / PV are single 3-D einsums
    # batched over n = H*bb (no per-head softmax / einsum instances).
    # TODO(synk): replace the slice+stack with a rank-4 transpose (and the
    # per-head W_o folds with one (D, D) GEMM) once Mosaic guarantees those
    # relayouts; this formulation only uses proven-to-lower ops.
    def split_heads(t3):               # (bb, S, D) -> (H*bb, S, hd)
        return jnp.concatenate(
            [t3[:, :, h * hd:(h + 1) * hd] for h in range(H)], axis=0)

    qh = split_heads(q3)
    kh = split_heads(k3)
    vh = split_heads(v3)

    s = jnp.einsum('nqd,nkd->nqk', qh, kh, preferred_element_type=jnp.float32)
    s = s - jnp.max(s, axis=-1, keepdims=True)
    p = jnp.exp(s)
    p = p * pl.reciprocal(jnp.sum(p, axis=-1, keepdims=True), approx=True)
    ctx = jnp.einsum('nqk,nkd->nqd', p.astype(cdt), vh,
                     preferred_element_type=jnp.float32)   # (H*bb, S, hd)

    # Output projection: fold each head's context through its (hd, D) slice of
    # W_o (leading-dim indexing only; no concatenate, no zeros accumulator).
    ctx_h = ctx.reshape(H, rows, hd).astype(cdt)
    attn = jnp.dot(ctx_h[0], wo_h[0], preferred_element_type=jnp.float32)
    for h in range(1, H):
        attn = attn + jnp.dot(ctx_h[h], wo_h[h],
                              preferred_element_type=jnp.float32)
    attn = attn + bo[...]

    # ---- residual + LayerNorm 1 (single-pass moments, f32) -----------------
    x1 = x + attn
    mu1 = jnp.mean(x1, axis=-1, keepdims=True)
    var1 = jnp.mean(x1 * x1, axis=-1, keepdims=True) - mu1 * mu1
    x1n = (x1 - mu1) * jax.lax.rsqrt(var1 + eps) * g1[...] + be1[...]

    # ---- feed-forward (relu) + residual + LayerNorm 2 -----------------------
    h1 = jnp.maximum(
        jnp.dot(x1n.astype(cdt), w1f[...],
                preferred_element_type=jnp.float32) + b1f[...], 0.0)
    ff = jnp.dot(h1.astype(cdt), w2f[...],
                 preferred_element_type=jnp.float32) + b2f[...]
    x2 = x1n + ff
    mu2 = jnp.mean(x2, axis=-1, keepdims=True)
    var2 = jnp.mean(x2 * x2, axis=-1, keepdims=True) - mu2 * mu2
    x2n = (x2 - mu2) * jax.lax.rsqrt(var2 + eps) * g2[...] + be2[...]

    # ---- BatchNorm1d over d_model (eval mode, folded affine) ---------------
    y = x2n * bns[...] + bnh[...]
    o_ref[...] = y.astype(o_ref.dtype).reshape(o_ref.shape)


def _pick_batch_tile(batch, seq_len, target_rows, sub_mult):
    """Largest bb dividing `batch` such that rows = bb*seq_len is a legal
    sublane tile (multiple of `sub_mult`), rows <= target_rows, and -- when
    batch >= 2 -- bb <= batch//2 so the grid has >= 2 steps (keeps both v7x
    TensorCores busy; no-op on single-TC v5e/v6e).  Falls back to one
    full-array grid step (always a legal block) when nothing fits."""
    cap = batch // 2 if batch >= 2 else batch
    best = None
    for d in range(1, cap + 1):
        if batch % d != 0:
            continue
        rows = d * seq_len
        if rows % sub_mult != 0 or rows > target_rows:
            continue
        best = d
    if best is None:
        for d in range(1, cap + 1):          # ignore the target, keep legality
            if batch % d == 0 and (d * seq_len) % sub_mult == 0:
                best = d
                break
    if best is None:
        best = batch                         # grid=(1,): block == full array
    return best


def encoder_pallas(x, params, nhead, eps=1e-5, compute_dtype=jnp.float32,
                   lane_dense_io=None):
    B, S, D = x.shape
    head_dim = D // nhead
    F = params["w1"].shape[1]
    cdt = compute_dtype
    io_dtype = jnp.bfloat16 if cdt == jnp.bfloat16 else jnp.float32
    io_itemsize = jnp.dtype(io_dtype).itemsize

    # ---- parameters: fuse Q|K|V, split W_o per head, cast GEMM weights -----
    wqkv = jnp.concatenate(
        [params["wq"], params["wk"], params["wv"]], axis=1).astype(cdt)
    bqkv = jnp.concatenate([params["bq"], params["bk"], params["bv"]], axis=1)
    wo_h = params["wo"].reshape(nhead, head_dim, D).astype(cdt)
    plist = [
        wqkv, bqkv, wo_h, params["bo"],
        params["g1"], params["be1"],
        params["w1"].astype(cdt), params["b1"],
        params["w2"].astype(cdt), params["b2"],
        params["g2"], params["be2"],
        params["bn_scale"], params["bn_shift"],
    ]
    param_bytes = int(sum(int(p.size) * p.dtype.itemsize for p in plist))

    # ---- generation-aware VMEM budget (v7x: 64 MiB, v5e/v6e: 128 MiB) ------
    try:
        vmem_cap = int(pltpu.get_tpu_info().vmem_capacity_bytes)
    except Exception:
        vmem_cap = 64 * 2 ** 20                  # conservative (v7x-sized)
    vmem_ceiling = (vmem_cap * 3) // 4           # ~48 MiB v7x, ~96 MiB v5e/v6e

    # rough per-row f32 bytes of live intermediates in the kernel body
    per_row = 4 * (10 * D + F + 2 * nhead * S)
    budget = max(vmem_ceiling - 2 * param_bytes, 4 * 2 ** 20)
    target_rows = max(8, min(2048, ((budget // (3 * per_row)) // 8) * 8))

    # sublane multiple for the I/O blocks (8 rows for f32, 16 for bf16)
    sub_mult = 8 * (4 // io_itemsize)
    bb = _pick_batch_tile(B, S, target_rows, sub_mult)
    rows = bb * S                                # GEMM M dimension per step
    grid = (B // bb,)

    # ---- lane-dense I/O slabs: (rows, D) presented as (rows*D/128, 128) ----
    lane_pack = 128 // D if (D < 128 and 128 % D == 0) else 1
    if lane_dense_io is None:
        lane_dense_io = (lane_pack > 1
                         and rows % (sub_mult * lane_pack) == 0
                         and (B * S) % lane_pack == 0)

    x2d = x.reshape(B * S, D).astype(io_dtype)
    if lane_dense_io:
        x_in = x2d.reshape((B * S) // lane_pack, 128)
        blk = (rows // lane_pack, 128)
    else:
        x_in = x2d
        blk = (rows, D)

    in_specs = [pl.BlockSpec(blk, lambda i: (i, 0))]
    for p in plist:
        # constant across the grid -> single-buffered (no 2x VMEM copies)
        in_specs.append(
            pl.BlockSpec(p.shape, functools.partial(_const_index, p.ndim),
                         pipeline_mode=pl.Buffered(1)))
    out_spec = pl.BlockSpec(blk, lambda i: (i, 0))
    out_shape = jax.ShapeDtypeStruct(x_in.shape, io_dtype)

    # Advisory cost estimate for XLA scheduling around the custom call.
    flops = int(2 * B * S * D * (4 * D + 2 * F) + 4 * B * S * S * D)
    transcendentals = int(B * nhead * S * S + 6 * B * S)
    bytes_accessed = int(param_bytes + 2 * B * S * D * io_itemsize)

    vmem_need = (param_bytes
                 + 4 * rows * D * io_itemsize        # double-buffered in/out
                 + rows * per_row)                   # live intermediates
    vmem_limit = int(min(vmem_ceiling, max(32 * 2 ** 20, 2 * vmem_need)))

    kern = functools.partial(_encoder_kernel, nhead, head_dim, S, D, eps, cdt)
    out = pl.pallas_call(
        kern,
        out_shape=out_shape,
        grid_spec=pltpu.PrefetchScalarGridSpec(
            num_scalar_prefetch=0,
            grid=grid,
            in_specs=in_specs,
            out_specs=out_spec,
        ),
        compiler_params=pltpu.CompilerParams(
            dimension_semantics=("parallel",),
            vmem_limit_bytes=vmem_limit,
        ),
        cost_estimate=pl.CostEstimate(
            flops=flops,
            transcendentals=transcendentals,
            bytes_accessed=bytes_accessed),
    )(x_in, *plist)
    return out.reshape(B, S, D)


def encoder_reference(x, params, nhead, eps=1e-5):
    """Pure-JAX reference mirroring nn.TransformerEncoderLayer (eval) + BN1d (eval)."""
    B, S, D = x.shape
    hd = D // nhead

    def ln(y, g, b):
        mu = y.mean(-1, keepdims=True)
        var = ((y - mu) ** 2).mean(-1, keepdims=True)
        return (y - mu) / jnp.sqrt(var + eps) * g + b

    q = x @ params["wq"] + params["bq"]
    k = x @ params["wk"] + params["bk"]
    v = x @ params["wv"] + params["bv"]
    qh = q.reshape(B, S, nhead, hd).transpose(0, 2, 1, 3)
    kh = k.reshape(B, S, nhead, hd).transpose(0, 2, 1, 3)
    vh = v.reshape(B, S, nhead, hd).transpose(0, 2, 1, 3)
    s = (qh @ kh.transpose(0, 1, 3, 2)) / math.sqrt(hd)
    p = jax.nn.softmax(s, axis=-1)
    ctx = (p @ vh).transpose(0, 2, 1, 3).reshape(B, S, D)
    attn = ctx @ params["wo"] + params["bo"]
    x1 = ln(x + attn, params["g1"], params["be1"])
    ff = jnp.maximum(x1 @ params["w1"] + params["b1"], 0.0) @ params["w2"] + params["b2"]
    x2 = ln(x1 + ff, params["g2"], params["be2"])
    return x2 * params["bn_scale"] + params["bn_shift"]


def make_params(key, d_model, dim_feedforward, eps=1e-5):
    ks = jax.random.split(key, 16)

    def nrm(k, shape, scale=0.1):
        return (jax.random.normal(k, shape) * scale).astype(jnp.float32)

    D, F = d_model, dim_feedforward
    bn_gamma = 1.0 + nrm(ks[12], (1, D))
    bn_beta = nrm(ks[13], (1, D))
    bn_mean = nrm(ks[14], (1, D))
    bn_var = 1.0 + 0.5 * jax.random.uniform(ks[15], (1, D), dtype=jnp.float32)
    bn_scale = bn_gamma / jnp.sqrt(bn_var + eps)
    bn_shift = bn_beta - bn_mean * bn_scale

    return {
        "wq": nrm(ks[0], (D, D)), "wk": nrm(ks[1], (D, D)), "wv": nrm(ks[2], (D, D)),
        "bq": nrm(ks[3], (1, D)), "bk": nrm(ks[4], (1, D)), "bv": nrm(ks[5], (1, D)),
        "wo": nrm(ks[6], (D, D)), "bo": nrm(ks[7], (1, D)),
        "g1": 1.0 + nrm(ks[8], (1, D)), "be1": nrm(ks[9], (1, D)),
        "w1": nrm(ks[10], (D, F)), "b1": nrm(ks[11], (1, F)),
        "w2": nrm(ks[10], (F, D)) * 0.5, "b2": nrm(ks[11], (1, D)) * 0.5,
        "g2": 1.0 + nrm(ks[8], (1, D)) * 0.5, "be2": nrm(ks[9], (1, D)) * 0.5,
        "bn_scale": bn_scale.astype(jnp.float32),
        "bn_shift": bn_shift.astype(jnp.float32),
    }


if __name__ == "__main__":
    B, S, D, NHEAD = 2, 8, 32, 4
    DIM_FF = 4 * D

    key = jax.random.PRNGKey(0)
    k_x, k_p = jax.random.split(key)
    x = jax.random.normal(k_x, (B, S, D), dtype=jnp.float32)
    params = make_params(k_p, D, DIM_FF)

    ref = encoder_reference(x, params, NHEAD)

    # f32 compute path (matches the f32 PyTorch module; approx-reciprocal
    # softmax is the only deviation, hence the 2e-3 tolerance).
    out_f32 = jax.block_until_ready(encoder_pallas(x, params, NHEAD))
    assert out_f32.shape == (B, S, D)
    err32 = float(jnp.max(jnp.abs(out_f32 - ref)))
    assert jnp.allclose(out_f32, ref, rtol=2e-3, atol=2e-3), (
        f"f32 max abs err = {err32}")

    # bf16 path: bf16 MXU operands and bf16 activation I/O, f32 accumulation /
    # softmax / LayerNorm inside the kernel.
    out_bf16 = jax.block_until_ready(
        encoder_pallas(x, params, NHEAD, compute_dtype=jnp.bfloat16))
    out_bf16 = out_bf16.astype(jnp.float32)
    errbf = float(jnp.max(jnp.abs(out_bf16 - ref)))
    assert jnp.allclose(out_bf16, ref, rtol=1e-1, atol=1e-1), (
        f"bf16 max abs err = {errbf}")

    print("KERNEL_OK")
</pallas_src>

<mosaic_0001>
module attributes {stable_mosaic.version = 11 : i64} {
  func.func @_encoder_kernel(%arg0: i32, %arg1: memref<8x32xf32, #tpu.memory_space<vmem>>, %arg2: memref<32x96xf32, #tpu.memory_space<vmem>>, %arg3: memref<1x96xf32, #tpu.memory_space<vmem>>, %arg4: memref<4x8x32xf32, #tpu.memory_space<vmem>>, %arg5: memref<1x32xf32, #tpu.memory_space<vmem>>, %arg6: memref<1x32xf32, #tpu.memory_space<vmem>>, %arg7: memref<1x32xf32, #tpu.memory_space<vmem>>, %arg8: memref<32x128xf32, #tpu.memory_space<vmem>>, %arg9: memref<1x128xf32, #tpu.memory_space<vmem>>, %arg10: memref<128x32xf32, #tpu.memory_space<vmem>>, %arg11: memref<1x32xf32, #tpu.memory_space<vmem>>, %arg12: memref<1x32xf32, #tpu.memory_space<vmem>>, %arg13: memref<1x32xf32, #tpu.memory_space<vmem>>, %arg14: memref<1x32xf32, #tpu.memory_space<vmem>>, %arg15: memref<1x32xf32, #tpu.memory_space<vmem>>, %arg16: memref<8x32xf32, #tpu.memory_space<vmem>>) attributes {dimension_semantics = [#tpu.dimension_semantics<parallel>], iteration_bounds = array<i64: 2>, scalar_prefetch = 0 : i64, scratch_operands = 0 : i64, tpu.core_type = #tpu.core_type<tc>, window_params = [{transform_indices = @transform_0, window_bounds = array<i64: 8, 32>}, {pipeline_mode = #tpu.pipeline_mode<synchronous>, transform_indices = @transform_1, window_bounds = array<i64: 32, 96>}, {pipeline_mode = #tpu.pipeline_mode<synchronous>, transform_indices = @transform_2, window_bounds = array<i64: 1, 96>}, {pipeline_mode = #tpu.pipeline_mode<synchronous>, transform_indices = @transform_3, window_bounds = array<i64: 4, 8, 32>}, {pipeline_mode = #tpu.pipeline_mode<synchronous>, transform_indices = @transform_4, window_bounds = array<i64: 1, 32>}, {pipeline_mode = #tpu.pipeline_mode<synchronous>, transform_indices = @transform_5, window_bounds = array<i64: 1, 32>}, {pipeline_mode = #tpu.pipeline_mode<synchronous>, transform_indices = @transform_6, window_bounds = array<i64: 1, 32>}, {pipeline_mode = #tpu.pipeline_mode<synchronous>, transform_indices = @transform_7, window_bounds = array<i64: 32, 128>}, {pipeline_mode = #tpu.pipeline_mode<synchronous>, transform_indices = @transform_8, window_bounds = array<i64: 1, 128>}, {pipeline_mode = #tpu.pipeline_mode<synchronous>, transform_indices = @transform_9, window_bounds = array<i64: 128, 32>}, {pipeline_mode = #tpu.pipeline_mode<synchronous>, transform_indices = @transform_10, window_bounds = array<i64: 1, 32>}, {pipeline_mode = #tpu.pipeline_mode<synchronous>, transform_indices = @transform_11, window_bounds = array<i64: 1, 32>}, {pipeline_mode = #tpu.pipeline_mode<synchronous>, transform_indices = @transform_12, window_bounds = array<i64: 1, 32>}, {pipeline_mode = #tpu.pipeline_mode<synchronous>, transform_indices = @transform_13, window_bounds = array<i64: 1, 32>}, {pipeline_mode = #tpu.pipeline_mode<synchronous>, transform_indices = @transform_14, window_bounds = array<i64: 1, 32>}, {transform_indices = @transform_15, window_bounds = array<i64: 8, 32>}]} {
    %c0 = arith.constant 0 : index
    %c0_0 = arith.constant 0 : index
    %0 = vector.load %arg1[%c0, %c0_0] : memref<8x32xf32, #tpu.memory_space<vmem>>, vector<8x32xf32>
    %c0_1 = arith.constant 0 : index
    %c0_2 = arith.constant 0 : index
    %1 = vector.load %arg2[%c0_1, %c0_2] : memref<32x96xf32, #tpu.memory_space<vmem>>, vector<32x96xf32>
    %cst = arith.constant dense<0.000000e+00> : vector<8x96xf32>
    %2 = tpu.matmul %0, %1, %cst {dimension_numbers = #tpu.dot_dimension_numbers<[1], [0], [0], [1], [0, 0, 1, 1], [], []>} : vector<8x32xf32>, vector<32x96xf32>, vector<8x96xf32> -> vector<8x96xf32>
    %c0_3 = arith.constant 0 : index
    %c0_4 = arith.constant 0 : index
    %3 = vector.load %arg3[%c0_3, %c0_4] : memref<1x96xf32, #tpu.memory_space<vmem>>, vector<1x96xf32>
    %4 = vector.broadcast %3 : vector<1x96xf32> to vector<8x96xf32>
    %5 = arith.addf %2, %4 : vector<8x96xf32>
    %6 = vector.extract_strided_slice %5 {offsets = [0, 0], sizes = [8, 32], strides = [1, 1]} : vector<8x96xf32> to vector<8x32xf32>
    %cst_5 = arith.constant 0.353553385 : f32
    %7 = vector.broadcast %cst_5 : f32 to vector<8x32xf32>
    %8 = arith.mulf %6, %7 : vector<8x32xf32>
    %9 = vector.shape_cast %8 : vector<8x32xf32> to vector<1x8x32xf32>
    %10 = vector.extract_strided_slice %5 {offsets = [0, 32], sizes = [8, 32], strides = [1, 1]} : vector<8x96xf32> to vector<8x32xf32>
    %11 = vector.shape_cast %10 : vector<8x32xf32> to vector<1x8x32xf32>
    %12 = vector.extract_strided_slice %5 {offsets = [0, 64], sizes = [8, 32], strides = [1, 1]} : vector<8x96xf32> to vector<8x32xf32>
    %13 = vector.shape_cast %12 : vector<8x32xf32> to vector<1x8x32xf32>
    %14 = vector.extract_strided_slice %9 {offsets = [0, 0, 0], sizes = [1, 8, 8], strides = [1, 1, 1]} : vector<1x8x32xf32> to vector<1x8x8xf32>
    %15 = vector.extract_strided_slice %9 {offsets = [0, 0, 8], sizes = [1, 8, 8], strides = [1, 1, 1]} : vector<1x8x32xf32> to vector<1x8x8xf32>
    %16 = vector.extract_strided_slice %9 {offsets = [0, 0, 16], sizes = [1, 8, 8], strides = [1, 1, 1]} : vector<1x8x32xf32> to vector<1x8x8xf32>
    %17 = vector.extract_strided_slice %9 {offsets = [0, 0, 24], sizes = [1, 8, 8], strides = [1, 1, 1]} : vector<1x8x32xf32> to vector<1x8x8xf32>
    %18 = tpu.concatenate %14, %15, %16, %17 in 0 : vector<1x8x8xf32>, vector<1x8x8xf32>, vector<1x8x8xf32>, vector<1x8x8xf32> -> vector<4x8x8xf32>
    %19 = vector.extract_strided_slice %11 {offsets = [0, 0, 0], sizes = [1, 8, 8], strides = [1, 1, 1]} : vector<1x8x32xf32> to vector<1x8x8xf32>
    %20 = vector.extract_strided_slice %11 {offsets = [0, 0, 8], sizes = [1, 8, 8], strides = [1, 1, 1]} : vector<1x8x32xf32> to vector<1x8x8xf32>
    %21 = vector.extract_strided_slice %11 {offsets = [0, 0, 16], sizes = [1, 8, 8], strides = [1, 1, 1]} : vector<1x8x32xf32> to vector<1x8x8xf32>
    %22 = vector.extract_strided_slice %11 {offsets = [0, 0, 24], sizes = [1, 8, 8], strides = [1, 1, 1]} : vector<1x8x32xf32> to vector<1x8x8xf32>
    %23 = tpu.concatenate %19, %20, %21, %22 in 0 : vector<1x8x8xf32>, vector<1x8x8xf32>, vector<1x8x8xf32>, vector<1x8x8xf32> -> vector<4x8x8xf32>
    %24 = vector.extract_strided_slice %13 {offsets = [0, 0, 0], sizes = [1, 8, 8], strides = [1, 1, 1]} : vector<1x8x32xf32> to vector<1x8x8xf32>
    %25 = vector.extract_strided_slice %13 {offsets = [0, 0, 8], sizes = [1, 8, 8], strides = [1, 1, 1]} : vector<1x8x32xf32> to vector<1x8x8xf32>
    %26 = vector.extract_strided_slice %13 {offsets = [0, 0, 16], sizes = [1, 8, 8], strides = [1, 1, 1]} : vector<1x8x32xf32> to vector<1x8x8xf32>
    %27 = vector.extract_strided_slice %13 {offsets = [0, 0, 24], sizes = [1, 8, 8], strides = [1, 1, 1]} : vector<1x8x32xf32> to vector<1x8x8xf32>
    %28 = tpu.concatenate %24, %25, %26, %27 in 0 : vector<1x8x8xf32>, vector<1x8x8xf32>, vector<1x8x8xf32>, vector<1x8x8xf32> -> vector<4x8x8xf32>
    "tpu.trace_start"() <{level = 10 : i32, message = "nqd,nkd->nqk"}> : () -> ()
    %cst_6 = arith.constant dense<0.000000e+00> : vector<4x8x8xf32>
    %29 = tpu.matmul %18, %23, %cst_6 {dimension_numbers = #tpu.dot_dimension_numbers<[2], [2], [1], [1], [0, 0, 0, 1, 1, 1], [0], [0]>} : vector<4x8x8xf32>, vector<4x8x8xf32>, vector<4x8x8xf32> -> vector<4x8x8xf32>
    "tpu.trace_stop"() : () -> ()
    %cst_7 = arith.constant dense<0xFF800000> : vector<4x8xf32>
    %30 = vector.multi_reduction <maximumf>, %29, %cst_7 [2] : vector<4x8x8xf32> to vector<4x8xf32>
    %31 = vector.shape_cast %30 : vector<4x8xf32> to vector<4x8x1xf32>
    %32 = vector.broadcast %31 : vector<4x8x1xf32> to vector<4x8x8xf32>
    %33 = arith.subf %29, %32 : vector<4x8x8xf32>
    %34 = math.exp %33 : vector<4x8x8xf32>
    %cst_8 = arith.constant dense<0.000000e+00> : vector<4x8xf32>
    %35 = vector.multi_reduction <add>, %34, %cst_8 [2] : vector<4x8x8xf32> to vector<4x8xf32>
    %36 = vector.shape_cast %35 : vector<4x8xf32> to vector<4x8x1xf32>
    %37 = tpu.reciprocal %36 {approx = true} : vector<4x8x1xf32> -> vector<4x8x1xf32>
    %38 = vector.broadcast %37 : vector<4x8x1xf32> to vector<4x8x8xf32>
    %39 = arith.mulf %34, %38 : vector<4x8x8xf32>
    "tpu.trace_start"() <{level = 10 : i32, message = "nqk,nkd->nqd"}> : () -> ()
    %cst_9 = arith.constant dense<0.000000e+00> : vector<4x8x8xf32>
    %40 = tpu.matmul %39, %28, %cst_9 {dimension_numbers = #tpu.dot_dimension_numbers<[2], [1], [1], [2], [0, 0, 0, 1, 1, 2], [0], [0]>} : vector<4x8x8xf32>, vector<4x8x8xf32>, vector<4x8x8xf32> -> vector<4x8x8xf32>
    "tpu.trace_stop"() : () -> ()
    %41 = vector.extract_strided_slice %40 {offsets = [0, 0, 0], sizes = [1, 8, 8], strides = [1, 1, 1]} : vector<4x8x8xf32> to vector<1x8x8xf32>
    %42 = vector.shape_cast %41 : vector<1x8x8xf32> to vector<8x8xf32>
    %c0_10 = arith.constant 0 : index
    %c0_11 = arith.constant 0 : index
    %c0_12 = arith.constant 0 : index
    %43 = vector.load %arg4[%c0_10, %c0_11, %c0_12] : memref<4x8x32xf32, #tpu.memory_space<vmem>>, vector<1x8x32xf32>
    %44 = vector.shape_cast %43 : vector<1x8x32xf32> to vector<8x32xf32>
    %cst_13 = arith.constant dense<0.000000e+00> : vector<8x32xf32>
    %45 = tpu.matmul %42, %44, %cst_13 {dimension_numbers = #tpu.dot_dimension_numbers<[1], [0], [0], [1], [0, 0, 1, 1], [], []>} : vector<8x8xf32>, vector<8x32xf32>, vector<8x32xf32> -> vector<8x32xf32>
    %46 = vector.extract_strided_slice %40 {offsets = [1, 0, 0], sizes = [1, 8, 8], strides = [1, 1, 1]} : vector<4x8x8xf32> to vector<1x8x8xf32>
    %47 = vector.shape_cast %46 : vector<1x8x8xf32> to vector<8x8xf32>
    %c1 = arith.constant 1 : index
    %c0_14 = arith.constant 0 : index
    %c0_15 = arith.constant 0 : index
    %48 = vector.load %arg4[%c1, %c0_14, %c0_15] : memref<4x8x32xf32, #tpu.memory_space<vmem>>, vector<1x8x32xf32>
    %49 = vector.shape_cast %48 : vector<1x8x32xf32> to vector<8x32xf32>
    %cst_16 = arith.constant dense<0.000000e+00> : vector<8x32xf32>
    %50 = tpu.matmul %47, %49, %cst_16 {dimension_numbers = #tpu.dot_dimension_numbers<[1], [0], [0], [1], [0, 0, 1, 1], [], []>} : vector<8x8xf32>, vector<8x32xf32>, vector<8x32xf32> -> vector<8x32xf32>
    %51 = arith.addf %45, %50 : vector<8x32xf32>
    %52 = vector.extract_strided_slice %40 {offsets = [2, 0, 0], sizes = [1, 8, 8], strides = [1, 1, 1]} : vector<4x8x8xf32> to vector<1x8x8xf32>
    %53 = vector.shape_cast %52 : vector<1x8x8xf32> to vector<8x8xf32>
    %c2 = arith.constant 2 : index
    %c0_17 = arith.constant 0 : index
    %c0_18 = arith.constant 0 : index
    %54 = vector.load %arg4[%c2, %c0_17, %c0_18] : memref<4x8x32xf32, #tpu.memory_space<vmem>>, vector<1x8x32xf32>
    %55 = vector.shape_cast %54 : vector<1x8x32xf32> to vector<8x32xf32>
    %cst_19 = arith.constant dense<0.000000e+00> : vector<8x32xf32>
    %56 = tpu.matmul %53, %55, %cst_19 {dimension_numbers = #tpu.dot_dimension_numbers<[1], [0], [0], [1], [0, 0, 1, 1], [], []>} : vector<8x8xf32>, vector<8x32xf32>, vector<8x32xf32> -> vector<8x32xf32>
    %57 = arith.addf %51, %56 : vector<8x32xf32>
    %58 = vector.extract_strided_slice %40 {offsets = [3, 0, 0], sizes = [1, 8, 8], strides = [1, 1, 1]} : vector<4x8x8xf32> to vector<1x8x8xf32>
    %59 = vector.shape_cast %58 : vector<1x8x8xf32> to vector<8x8xf32>
    %c3 = arith.constant 3 : index
    %c0_20 = arith.constant 0 : index
    %c0_21 = arith.constant 0 : index
    %60 = vector.load %arg4[%c3, %c0_20, %c0_21] : memref<4x8x32xf32, #tpu.memory_space<vmem>>, vector<1x8x32xf32>
    %61 = vector.shape_cast %60 : vector<1x8x32xf32> to vector<8x32xf32>
    %cst_22 = arith.constant dense<0.000000e+00> : vector<8x32xf32>
    %62 = tpu.matmul %59, %61, %cst_22 {dimension_numbers = #tpu.dot_dimension_numbers<[1], [0], [0], [1], [0, 0, 1, 1], [], []>} : vector<8x8xf32>, vector<8x32xf32>, vector<8x32xf32> -> vector<8x32xf32>
    %63 = arith.addf %57, %62 : vector<8x32xf32>
    %c0_23 = arith.constant 0 : index
    %c0_24 = arith.constant 0 : index
    %64 = vector.load %arg5[%c0_23, %c0_24] : memref<1x32xf32, #tpu.memory_space<vmem>>, vector<1x32xf32>
    %65 = vector.broadcast %64 : vector<1x32xf32> to vector<8x32xf32>
    %66 = arith.addf %63, %65 : vector<8x32xf32>
    %67 = arith.addf %0, %66 : vector<8x32xf32>
    %cst_25 = arith.constant dense<0.000000e+00> : vector<8xf32>
    %68 = vector.multi_reduction <add>, %67, %cst_25 [1] : vector<8x32xf32> to vector<8xf32>
    %69 = vector.shape_cast %68 : vector<8xf32> to vector<8x1xf32>
    %cst_26 = arith.constant 3.200000e+01 : f32
    %70 = vector.broadcast %cst_26 : f32 to vector<8x1xf32>
    %71 = arith.divf %69, %70 : vector<8x1xf32>
    %72 = arith.mulf %67, %67 : vector<8x32xf32>
    %cst_27 = arith.constant dense<0.000000e+00> : vector<8xf32>
    %73 = vector.multi_reduction <add>, %72, %cst_27 [1] : vector<8x32xf32> to vector<8xf32>
    %74 = vector.shape_cast %73 : vector<8xf32> to vector<8x1xf32>
    %cst_28 = arith.constant 3.200000e+01 : f32
    %75 = vector.broadcast %cst_28 : f32 to vector<8x1xf32>
    %76 = arith.divf %74, %75 : vector<8x1xf32>
    %77 = arith.mulf %71, %71 : vector<8x1xf32>
    %78 = arith.subf %76, %77 : vector<8x1xf32>
    %79 = vector.broadcast %71 : vector<8x1xf32> to vector<8x32xf32>
    %80 = arith.subf %67, %79 : vector<8x32xf32>
    %cst_29 = arith.constant 9.99999974E-6 : f32
    %81 = vector.broadcast %cst_29 : f32 to vector<8x1xf32>
    %82 = arith.addf %78, %81 : vector<8x1xf32>
    %83 = math.rsqrt %82 : vector<8x1xf32>
    %84 = vector.broadcast %83 : vector<8x1xf32> to vector<8x32xf32>
    %85 = arith.mulf %80, %84 : vector<8x32xf32>
    %c0_30 = arith.constant 0 : index
    %c0_31 = arith.constant 0 : index
    %86 = vector.load %arg6[%c0_30, %c0_31] : memref<1x32xf32, #tpu.memory_space<vmem>>, vector<1x32xf32>
    %87 = vector.broadcast %86 : vector<1x32xf32> to vector<8x32xf32>
    %88 = arith.mulf %85, %87 : vector<8x32xf32>
    %c0_32 = arith.constant 0 : index
    %c0_33 = arith.constant 0 : index
    %89 = vector.load %arg7[%c0_32, %c0_33] : memref<1x32xf32, #tpu.memory_space<vmem>>, vector<1x32xf32>
    %90 = vector.broadcast %89 : vector<1x32xf32> to vector<8x32xf32>
    %91 = arith.addf %88, %90 : vector<8x32xf32>
    %c0_34 = arith.constant 0 : index
    %c0_35 = arith.constant 0 : index
    %92 = vector.load %arg8[%c0_34, %c0_35] : memref<32x128xf32, #tpu.memory_space<vmem>>, vector<32x128xf32>
    %cst_36 = arith.constant dense<0.000000e+00> : vector<8x128xf32>
    %93 = tpu.matmul %91, %92, %cst_36 {dimension_numbers = #tpu.dot_dimension_numbers<[1], [0], [0], [1], [0, 0, 1, 1], [], []>} : vector<8x32xf32>, vector<32x128xf32>, vector<8x128xf32> -> vector<8x128xf32>
    %c0_37 = arith.constant 0 : index
    %c0_38 = arith.constant 0 : index
    %94 = vector.load %arg9[%c0_37, %c0_38] : memref<1x128xf32, #tpu.memory_space<vmem>>, vector<1x128xf32>
    %95 = vector.broadcast %94 : vector<1x128xf32> to vector<8x128xf32>
    %96 = arith.addf %93, %95 : vector<8x128xf32>
    %cst_39 = arith.constant 0.000000e+00 : f32
    %97 = vector.broadcast %cst_39 : f32 to vector<8x128xf32>
    %98 = arith.maximumf %96, %97 : vector<8x128xf32>
    %c0_40 = arith.constant 0 : index
    %c0_41 = arith.constant 0 : index
    %99 = vector.load %arg10[%c0_40, %c0_41] : memref<128x32xf32, #tpu.memory_space<vmem>>, vector<128x32xf32>
    %cst_42 = arith.constant dense<0.000000e+00> : vector<8x32xf32>
    %100 = tpu.matmul %98, %99, %cst_42 {dimension_numbers = #tpu.dot_dimension_numbers<[1], [0], [0], [1], [0, 0, 1, 1], [], []>} : vector<8x128xf32>, vector<128x32xf32>, vector<8x32xf32> -> vector<8x32xf32>
    %c0_43 = arith.constant 0 : index
    %c0_44 = arith.constant 0 : index
    %101 = vector.load %arg11[%c0_43, %c0_44] : memref<1x32xf32, #tpu.memory_space<vmem>>, vector<1x32xf32>
    %102 = vector.broadcast %101 : vector<1x32xf32> to vector<8x32xf32>
    %103 = arith.addf %100, %102 : vector<8x32xf32>
    %104 = arith.addf %91, %103 : vector<8x32xf32>
    %cst_45 = arith.constant dense<0.000000e+00> : vector<8xf32>
    %105 = vector.multi_reduction <add>, %104, %cst_45 [1] : vector<8x32xf32> to vector<8xf32>
    %106 = vector.shape_cast %105 : vector<8xf32> to vector<8x1xf32>
    %cst_46 = arith.constant 3.200000e+01 : f32
    %107 = vector.broadcast %cst_46 : f32 to vector<8x1xf32>
    %108 = arith.divf %106, %107 : vector<8x1xf32>
    %109 = arith.mulf %104, %104 : vector<8x32xf32>
    %cst_47 = arith.constant dense<0.000000e+00> : vector<8xf32>
    %110 = vector.multi_reduction <add>, %109, %cst_47 [1] : vector<8x32xf32> to vector<8xf32>
    %111 = vector.shape_cast %110 : vector<8xf32> to vector<8x1xf32>
    %cst_48 = arith.constant 3.200000e+01 : f32
    %112 = vector.broadcast %cst_48 : f32 to vector<8x1xf32>
    %113 = arith.divf %111, %112 : vector<8x1xf32>
    %114 = arith.mulf %108, %108 : vector<8x1xf32>
    %115 = arith.subf %113, %114 : vector<8x1xf32>
    %116 = vector.broadcast %108 : vector<8x1xf32> to vector<8x32xf32>
    %117 = arith.subf %104, %116 : vector<8x32xf32>
    %cst_49 = arith.constant 9.99999974E-6 : f32
    %118 = vector.broadcast %cst_49 : f32 to vector<8x1xf32>
    %119 = arith.addf %115, %118 : vector<8x1xf32>
    %120 = math.rsqrt %119 : vector<8x1xf32>
    %121 = vector.broadcast %120 : vector<8x1xf32> to vector<8x32xf32>
    %122 = arith.mulf %117, %121 : vector<8x32xf32>
    %c0_50 = arith.constant 0 : index
    %c0_51 = arith.constant 0 : index
    %123 = vector.load %arg12[%c0_50, %c0_51] : memref<1x32xf32, #tpu.memory_space<vmem>>, vector<1x32xf32>
    %124 = vector.broadcast %123 : vector<1x32xf32> to vector<8x32xf32>
    %125 = arith.mulf %122, %124 : vector<8x32xf32>
    %c0_52 = arith.constant 0 : index
    %c0_53 = arith.constant 0 : index
    %126 = vector.load %arg13[%c0_52, %c0_53] : memref<1x32xf32, #tpu.memory_space<vmem>>, vector<1x32xf32>
    %127 = vector.broadcast %126 : vector<1x32xf32> to vector<8x32xf32>
    %128 = arith.addf %125, %127 : vector<8x32xf32>
    %c0_54 = arith.constant 0 : index
    %c0_55 = arith.constant 0 : index
    %129 = vector.load %arg14[%c0_54, %c0_55] : memref<1x32xf32, #tpu.memory_space<vmem>>, vector<1x32xf32>
    %130 = vector.broadcast %129 : vector<1x32xf32> to vector<8x32xf32>
    %131 = arith.mulf %128, %130 : vector<8x32xf32>
    %c0_56 = arith.constant 0 : index
    %c0_57 = arith.constant 0 : index
    %132 = vector.load %arg15[%c0_56, %c0_57] : memref<1x32xf32, #tpu.memory_space<vmem>>, vector<1x32xf32>
    %133 = vector.broadcast %132 : vector<1x32xf32> to vector<8x32xf32>
    %134 = arith.addf %131, %133 : vector<8x32xf32>
    %c0_58 = arith.constant 0 : index
    %c0_59 = arith.constant 0 : index
    %135 = vector.load %arg16[%c0_58, %c0_59] : memref<8x32xf32, #tpu.memory_space<vmem>>, vector<8x32xf32>
    tpu.vector_store %arg16[%c0_58, %c0_59], %134 {strides = array<i32>} : memref<8x32xf32, #tpu.memory_space<vmem>>, vector<8x32xf32>,
    return
  }
  func.func @transform_0(%arg0: i32) -> (i32, i32) {
    %c0_i32 = arith.constant 0 : i32
    %c0_i32_0 = arith.constant 0 : i32
    return %arg0, %c0_i32 : i32, i32
  }
  func.func @transform_1(%arg0: i32) -> (i32, i32) {
    %c0_i32 = arith.constant 0 : i32
    %c0_i32_0 = arith.constant 0 : i32
    %c0_i32_1 = arith.constant 0 : i32
    return %c0_i32, %c0_i32_0 : i32, i32
  }
  func.func @transform_2(%arg0: i32) -> (i32, i32) {
    %c0_i32 = arith.constant 0 : i32
    %c0_i32_0 = arith.constant 0 : i32
    %c0_i32_1 = arith.constant 0 : i32
    return %c0_i32, %c0_i32_0 : i32, i32
  }
  func.func @transform_3(%arg0: i32) -> (i32, i32, i32) {
    %c0_i32 = arith.constant 0 : i32
    %c0_i32_0 = arith.constant 0 : i32
    %c0_i32_1 = arith.constant 0 : i32
    %c0_i32_2 = arith.constant 0 : i32
    return %c0_i32, %c0_i32_0, %c0_i32_1 : i32, i32, i32
  }
  func.func @transform_4(%arg0: i32) -> (i32, i32) {
    %c0_i32 = arith.constant 0 : i32
    %c0_i32_0 = arith.constant 0 : i32
    %c0_i32_1 = arith.constant 0 : i32
    return %c0_i32, %c0_i32_0 : i32, i32
  }
  func.func @transform_5(%arg0: i32) -> (i32, i32) {
    %c0_i32 = arith.constant 0 : i32
    %c0_i32_0 = arith.constant 0 : i32
    %c0_i32_1 = arith.constant 0 : i32
    return %c0_i32, %c0_i32_0 : i32, i32
  }
  func.func @transform_6(%arg0: i32) -> (i32, i32) {
    %c0_i32 = arith.constant 0 : i32
    %c0_i32_0 = arith.constant 0 : i32
    %c0_i32_1 = arith.constant 0 : i32
    return %c0_i32, %c0_i32_0 : i32, i32
  }
  func.func @transform_7(%arg0: i32) -> (i32, i32) {
    %c0_i32 = arith.constant 0 : i32
    %c0_i32_0 = arith.constant 0 : i32
    %c0_i32_1 = arith.constant 0 : i32
    return %c0_i32, %c0_i32_0 : i32, i32
  }
  func.func @transform_8(%arg0: i32) -> (i32, i32) {
    %c0_i32 = arith.constant 0 : i32
    %c0_i32_0 = arith.constant 0 : i32
    %c0_i32_1 = arith.constant 0 : i32
    return %c0_i32, %c0_i32_0 : i32, i32
  }
  func.func @transform_9(%arg0: i32) -> (i32, i32) {
    %c0_i32 = arith.constant 0 : i32
    %c0_i32_0 = arith.constant 0 : i32
    %c0_i32_1 = arith.constant 0 : i32
    return %c0_i32, %c0_i32_0 : i32, i32
  }
  func.func @transform_10(%arg0: i32) -> (i32, i32) {
    %c0_i32 = arith.constant 0 : i32
    %c0_i32_0 = arith.constant 0 : i32
    %c0_i32_1 = arith.constant 0 : i32
    return %c0_i32, %c0_i32_0 : i32, i32
  }
  func.func @transform_11(%arg0: i32) -> (i32, i32) {
    %c0_i32 = arith.constant 0 : i32
    %c0_i32_0 = arith.constant 0 : i32
    %c0_i32_1 = arith.constant 0 : i32
    return %c0_i32, %c0_i32_0 : i32, i32
  }
  func.func @transform_12(%arg0: i32) -> (i32, i32) {
    %c0_i32 = arith.constant 0 : i32
    %c0_i32_0 = arith.constant 0 : i32
    %c0_i32_1 = arith.constant 0 : i32
    return %c0_i32, %c0_i32_0 : i32, i32
  }
  func.func @transform_13(%arg0: i32) -> (i32, i32) {
    %c0_i32 = arith.constant 0 : i32
    %c0_i32_0 = arith.constant 0 : i32
    %c0_i32_1 = arith.constant 0 : i32
    return %c0_i32, %c0_i32_0 : i32, i32
  }
  func.func @transform_14(%arg0: i32) -> (i32, i32) {
    %c0_i32 = arith.constant 0 : i32
    %c0_i32_0 = arith.constant 0 : i32
    %c0_i32_1 = arith.constant 0 : i32
    return %c0_i32, %c0_i32_0 : i32, i32
  }
  func.func @transform_15(%arg0: i32) -> (i32, i32) {
    %c0_i32 = arith.constant 0 : i32
    %c0_i32_0 = arith.constant 0 : i32
    return %arg0, %c0_i32 : i32, i32
  }
}

</mosaic_0001>

<bundles_post_ra>
// kernel: tpu_custom_call.1
= control target key start
LH: loop header
LB: loop body
LE: loop exit
PB: predicated region body
PF: predicated region fallthrough
CT: control target
= control target key end

     0   :  { %s1656_s0 = inlined_call_operand.vmem [shape: f32[16,32], index: 0, kind: input, shape index: {}]   ;;  %s1657_s1 = inlined_call_operand.vmem [shape: f32[32,96], index: 1, kind: input, shape index: {}]   ;;  %s1658_s2 = inlined_call_operand.vmem [shape: f32[1,96], index: 2, kind: input, shape index: {}]   ;;  %s1659_s3 = inlined_call_operand.vmem [shape: f32[4,8,32], index: 3, kind: input, shape index: {}]   ;;  %s1660_s4 = inlined_call_operand.vmem [shape: f32[1,32], index: 4, kind: input, shape index: {}]   ;;  %s1661_s5 = inlined_call_operand.vmem [shape: f32[1,32], index: 5, kind: input, shape index: {}]   ;;  %s1662_s6 = inlined_call_operand.vmem [shape: f32[1,32], index: 6, kind: input, shape index: {}]   ;;  %s1663_s7 = inlined_call_operand.vmem [shape: f32[32,128], index: 7, kind: input, shape index: {}]   ;;  %s1664_s8 = inlined_call_operand.vmem [shape: f32[1,128], index: 8, kind: input, shape index: {}]   ;;  %s1665_s9 = inlined_call_operand.vmem [shape: f32[128,32], index: 9, kind: input, shape index: {}]   ;;  %s1666_s10 = inlined_call_operand.vmem [shape: f32[1,32], index: 10, kind: input, shape index: {}]   ;;  %s1667_s11 = inlined_call_operand.vmem [shape: f32[1,32], index: 11, kind: input, shape index: {}]   ;;  %s1668_s12 = inlined_call_operand.vmem [shape: f32[1,32], index: 12, kind: input, shape index: {}]   ;;  %s1669_s13 = inlined_call_operand.vmem [shape: f32[1,32], index: 13, kind: input, shape index: {}]   ;;  %s1670_s14 = inlined_call_operand.vmem [shape: f32[1,32], index: 14, kind: input, shape index: {}]   ;;  %s1671_s15 = inlined_call_operand.hbm [shape: f32[16,32], index: 15, kind: output, shape index: {}]  }
   0x1   :  { %1677 = sst [smem:[#allocation10_spill]] %s1656_s0 }
   0x2   :  { %1678 = sst [smem:[#allocation11_spill]] %s1657_s1 }
   0x3   :  { %1679 = sst [smem:[#allocation12_spill]] %s1658_s2 }
   0x4   :  { %20 = vsyncpa [#allocation3], 0 }
   0x5   :  { %22 = vsyncpa [#allocation3 + $0x1], 0  ;;  %s1400_s18 = smov 0   ;;  %s1402_s19 = smov 0  }
   0x6   :  { %s1404_s20 = smov 0   ;;  %s1406_s21 = smov 0  }
   0x7 LB: > { %1680 = sst [smem:[#allocation5_spill]] %s1300_s18  ;;  %s1421_s22 = sadd.s32 4294967295, %s1312_s21   ;;  %s1312_s21 = sphi %s1406_s21, %s1692_s21   ;;  %s1308_s20 = sphi %s1404_s20, %s1694_s20   ;;  %s1304_s19 = sphi %s1402_s19, %s1696_s19   ;;  %s1300_s18 = sphi %s1400_s18, %s1695_s18  }
   0x8   : > { %1681 = sst [smem:[#allocation6_spill]] %s1308_s20  ;;  %s1132_s23 = sadd.s32 4294967294, %s1312_s21  }
   0x9   : > { %s1425_s24 = sadd.s32 1, %s1312_s21   ;;  %s355_s25 = sadd.s32 1, %s1308_s20 }
   0xa   : > { %1682 = sst [smem:[#allocation7_spill]] %s1425_s24  ;;  %s352_s26 = ssub.s32 %s1312_s21, %s1425_s24 }
   0xb   : > { %p365_p0 = scmp.ne.s32.totalorder %s1308_s20, %s1304_s19  ;;  %p353_p1 = scmp.eq.s32.totalorder %s352_s26, 0 }
   0xc   : > { %p366_p2 = scmp.eq.s32.totalorder %s1421_s22, 1  ;;  %p371_p3 = scmp.ne.s32.totalorder %s1304_s19, %s1300_s18 }
   0xd   : > { %p372_p4 = scmp.eq.s32.totalorder %s1132_s23, 1  ;;  %p1135_p7 = scmp.ge.s32.totalorder %s1312_s21, 1 }
   0xe   : > { %s1436_s27 = scalar_select %p353_p1, %s1308_s20, %s355_s25  }
   0xf   : > { %p1438_p5 = por %p366_p2, %p365_p0  ;;  %p1442_p6 = por %p372_p4, %p371_p3 }
  0x10   : > { %1683 = sst [smem:[#allocation8_spill]] %s1436_s27  ;;  %p439_p8 = scmp.lt.s32.totalorder %s1312_s21, 3 }
  0x11   : > { %s1685_s29 = scalar_select %p1442_p6, 1, 0 }
  0x12   : > { %p440_p9 = pnand %p1135_p7, %p439_p8 }
  0x13   : > { %1686 = sst [smem:[#allocation9_spill]] %s1685_s29  ;;  %p486_p10 = scmp.lt.s32.totalorder (!%p440_p9), %s1421_s22, 1 }
  0x14   : > { %443 = sbr.rel (%p440_p9) target bundleno = 1644 (0x66c), region = 80  ;;  %s1687_s1 = sld [smem:[#allocation11_spill]] (!%p440_p9) }
  0x15   : > { %s1688_s0 = sld [smem:[#allocation10_spill]] (!%p440_p9)  ;;  %s1314_s20 = smov (!%p440_p9), 104  }
  0x16   : > { %s1689_s2 = sld [smem:[#allocation12_spill]] (!%p440_p9)  ;;  %s1315_s24 = smov (!%p440_p9), 120  }
  0x17   : > { %s1317_s29 = smov (!%p440_p9), 112   ;;  %s483_s16 = sand.u32 (!%p440_p9), 1, %s1304_s19  }
  0x19   : > { %s487_s27 = scalar_select %p486_p10, %s1421_s22, 1  ;;  %vm499_vm0 = vcmask 261120   ;;  %vm540_vm1 = vcmask 64512   ;;  %v791_v58 = vld [vmem:[%s1659_s3] sm:$0xff] }
  0x1a   : > { %v494_v0 = vld [vmem:[%s1687_s1 + $0x18] sm:$0xff]  ;;  %v493_v1 = vld [vmem:[%s1687_s1 + $0x10] sm:$0xff]  ;;  %v492_v2 = vld [vmem:[%s1687_s1 + $0x8] sm:$0xff]  ;;  %835 = vmatpush.msra.mxu3 %v791_v58 }
  0x1b   : > { %515 = vmatpush.msra.mxu0 %v494_v0  ;;  %v491_v3 = vld [vmem:[%s1687_s1] sm:$0xff]  ;;  %s1137_s30 = sshll.u32 %s487_s27, 3  ;;  %s1316_s27 = smov 96  }
  0x1c   : > { %s489_s18 = scalar_lea.vmem %s1688_s0, %s1137_s30  ;;  %v1218_v5 = vld [vmem:[%s1689_s2] ss:$0 sm:$0xff] }
  0x1d   : > { %516 = vmatpush.msra.mxu0 %v493_v1  ;;  %v1465_v4 = vld [vmem:[%s489_s18] sm:$0xff]  ;;  %s1318_s18 = smov 64  }
  0x1f   : > { %517 = vmatpush.msra.mxu0 %v492_v2 }
  0x21   : > { %518 = vmatpush.msra.mxu0 %v491_v3 }
  0x22   : > { %1138 = vmatmul.msk.f32.vlgmr.msra.gmra.mxu0 %vm499_vm0, %v1465_v4 }
  0x9f   : > { %v520_v6 = vpop.f32.mrf.mxu0 }
  0xa0   : > { %v521_v7 = vadd.f32 %v1218_v5, %v520_v6  ;;  %v1151_v6 = vld [vmem:[%s1659_s3 + $0x8] sm:$0xff] }
  0xa2   : > { %536 = vrot.lane.b32.xlu1 %v521_v7, %s1314_s20  ;;  %532 = vrot.lane.b32.xlu0 %v521_v7, %s1315_s24  ;;  %v523_v12 = vmul.f32 0.35355338, %v521_v7 }
  0xaa   : > { %538 = vrot.lane.b32.xlu1 %v521_v7, %s1316_s27  ;;  %534 = vrot.lane.b32.xlu0 %v521_v7, %s1317_s29 }
 0x114   : > { %v1472_v8 = vpop.permute.xlu1 %536  ;;  %v533_v9 = vpop.permute.xlu0 %532 }
 0x115   : > { %617 = vrot.lane.b32.xlu1 %v1472_v8, %s1316_s27  ;;  %565 = vrot.lane.b32.xlu2 %v533_v9, %s1316_s27  ;;  %v1208_v32 = vpack.i.bf16 %v533_v9, %v521_v7  ;;  %v1156_v9 = vld [vmem:[%s1659_s3 + $0x18] sm:$0xff] }
 0x11c   : > { %v539_v10 = vpop.permute.xlu1 %538  ;;  %v1475_v11 = vpop.permute.xlu0 %534 }
 0x11d   : > { %1139 = vmatpush.xpose.msk.msra.mxu1 %vm540_vm1, %v539_v10  ;;  %591 = vrot.lane.b32.xlu0 %v1475_v11, %s1316_s27  ;;  %v1213_v54 = vpack.i.bf16 %v1472_v8, %v1475_v11  ;;  %v1154_v8 = vld [vmem:[%s1659_s3 + $0x10] sm:$0xff]  ;;  %s1058_s27 = scalar_lea.sflag [#allocation3], %s483_s16 }
 0x11e   : > { %525 = vrot.lane.b32.xlu2 %v523_v12, %s1315_s24  ;;  %s1160_s24 = sshll.u32 %s1421_s22, 3 }
 0x11f   : > { %s1068_s0 = scalar_lea.hbm %s1671_s15, %s1160_s24 }
 0x120   : > { %1140 = vmatmul.msk.f32.vlgmr.msra.gmra.mxu1 %vm540_vm1, %v523_v12  ;;  %s1072_s2 = sshll.u32 %s1068_s0, 4  ;;  %s1073_s2 = int_to_ptr.hbm [resolvable:$true] %s1072_s2 }
 0x125   : > { %529 = vrot.lane.b32.xlu0 %v523_v12, %s1314_s20  ;;  %s1136_s20 = sshll.u32 %s483_s16, 3 }
 0x126   : > { %527 = vrot.lane.b32.xlu2 %v523_v12, %s1317_s29  ;;  %s485_s22 = scalar_lea.vmem [#allocation2], %s1136_s20  ;;  %s1264_s29 = sshra.s32 %s1073_s2, 4  ;;  %s1265_s29 = int_to_ptr.hbm [resolvable:$true] %s1264_s29 }
 0x127   : > { %s1070_s1 = sshll.u32 %s485_s22, 4  ;;  %s1270_s20 = scalar_lea.hbm %s1671_s15, 16  ;;  %s1071_s1 = int_to_ptr.vmem [resolvable:$true] %s1070_s1 }
 0x128   : > { %p1271_p0 = scmp.lt.s32.totalorder %s1265_s29, %s1671_s15 }
 0x16f   : > { %v566_v13 = vpop.permute.xlu2 %565 }
 0x170   : > { %1141 = vmatpush.xpose.msk.msra.mxu2 %vm540_vm1, %v566_v13 }
 0x178   : > { %v526_v14 = vpop.permute.xlu2 %525 }
 0x179   : > { %1142 = vmatmul.msk.f32.vlgmr.msra.gmra.mxu2 %vm540_vm1, %v526_v14 }
 0x180   : > { %v528_v17 = vpop.permute.xlu2 %527 }
 0x187   : > { %v618_v15 = vpop.permute.xlu1 %617 }
 0x188   : > { %1145 = vmatpush.xpose.msk.msrb.mxu1 %vm540_vm1, %v618_v15 }
 0x18f   : > { %v592_v16 = vpop.permute.xlu0 %591 }
 0x190   : > { %1143 = vmatpush.xpose.msk.msrb.mxu0 %vm540_vm1, %v592_v16 }
 0x193   : > { %1144 = vmatmul.msk.f32.vlgmr.msrb.gmra.mxu0 %vm540_vm1, %v528_v17  ;;  %v1219_v17 = vld [vmem:[%s1660_s4] ss:$0 sm:$0xff] }
 0x197   : > { %v530_v18 = vpop.permute.xlu0 %529 }
 0x198   : > { %1146 = vmatmul.msk.f32.vlgmr.msrb.gmra.mxu1 %vm540_vm1, %v530_v18 }
 0x19d   : > { %v562_v19 = vpop.f32.mrf.mxu1 }
 0x19e   : > { %v643_v20 = vsel %vm540_vm1, %v562_v19, -inf }
 0x19f   : > { %644 = vmax.xlane.f32.xlu1 %v643_v20 }
 0x1fc   : > { %v588_v21 = vpop.f32.mrf.mxu2 }
 0x1fd   : > { %v646_v22 = vsel %vm540_vm1, %v588_v21, -inf }
 0x1fe   : > { %647 = vmax.xlane.f32.xlu2 %v646_v22 }
 0x210   : > { %v614_v23 = vpop.f32.mrf.mxu0 }
 0x211   : > { %v649_v24 = vsel %vm540_vm1, %v614_v23, -inf }
 0x212   : > { %650 = vmax.xlane.f32.xlu0 %v649_v24  ;;  %v645_v25 = vpop.xlane.xlu1 %644 }
 0x213   : > { %v655_v26 = vsub.f32 %v562_v19, %v645_v25  ;;  %v1319_v25 = vmov 32.0  }
 0x215   : > { %v659_v27 = vmul.f32 1.442695, %v655_v26  ;;  %v640_v28 = vpop.f32.mrf.mxu1 }
 0x216   : > { %v652_v29 = vsel %vm540_vm1, %v640_v28, -inf }
 0x217   : > { %1228 = vpow2.f32 %v659_v27  ;;  %653 = vmax.xlane.f32.xlu2 %v652_v29 }
 0x21d   : > { %v1229_v30 = vpop.eup %1228 }
 0x21e   : > { %v667_v31 = vsel %vm540_vm1, %v1229_v30, 0.0 }
 0x21f   : > { %668 = vadd.xlane.f32.xlu1 %v667_v31  ;;  %v941_v31 = vld [vmem:[%s1663_s7 + $0x10] sm:$0xff] }
 0x226   : > { %1209 = vrot.lane.b32.xlu0 %v1208_v32, %s1318_s18  ;;  %v940_v32 = vld [vmem:[%s1663_s7 + $0x8] sm:$0xff] }
 0x271   : > { %v648_v33 = vpop.xlane.xlu2 %647 }
 0x272   : > { %v656_v34 = vsub.f32 %v588_v21, %v648_v33 }
 0x274   : > { %v661_v35 = vmul.f32 1.442695, %v656_v34  ;;  %v939_v34 = vld [vmem:[%s1663_s7] sm:$0xff] }
 0x276   : > { %1230 = vpow2.f32 %v661_v35 }
 0x27c   : > { %v1231_v36 = vpop.eup %1230 }
 0x27d   : > { %v670_v37 = vsel %vm540_vm1, %v1231_v36, 0.0 }
 0x27e   : > { %671 = vadd.xlane.f32.xlu2 %v670_v37  ;;  %v986_v37 = vld [vmem:[%s1665_s9 + $0x78] sm:$0xff] }
 0x27f   : > { %991 = vmatpush.msrb.mxu3 %v986_v37  ;;  %v1226_v37 = vld [vmem:[%s1669_s13] ss:$0 sm:$0xff] }
 0x285   : > { %v651_v38 = vpop.xlane.xlu0 %650 }
 0x286   : > { %v657_v39 = vsub.f32 %v614_v23, %v651_v38  ;;  %v985_v38 = vld [vmem:[%s1665_s9 + $0x70] sm:$0xff] }
 0x287   : > { %992 = vmatpush.msrb.mxu3 %v985_v38 }
 0x288   : > { %v663_v40 = vmul.f32 1.442695, %v657_v39 }
 0x28a   : > { %1232 = vpow2.f32 %v663_v40  ;;  %v654_v41 = vpop.xlane.xlu2 %653 }
 0x28b   : > { %v658_v42 = vsub.f32 %v640_v28, %v654_v41 }
 0x28d   : > { %v665_v43 = vmul.f32 1.442695, %v658_v42  ;;  %v984_v42 = vld [vmem:[%s1665_s9 + $0x68] sm:$0xff] }
 0x28e   : > { %993 = vmatpush.msrb.mxu3 %v984_v42 }
 0x28f   : > { %1234 = vpow2.f32 %v665_v43 }
 0x290   : > { %v1233_v44 = vpop.eup %1232 }
 0x291   : > { %v673_v45 = vsel %vm540_vm1, %v1233_v44, 0.0 }
 0x292   : > { %674 = vadd.xlane.f32.xlu1 %v673_v45  ;;  %v669_v46 = vpop.xlane.xlu1 %668 }
 0x293   : > { %1236 = vrcp.f32 %v669_v46  ;;  %v982_v46 = vld [vmem:[%s1665_s9 + $0x58] sm:$0xff] }
 0x295   : > { %v1235_v47 = vpop.eup %1234 }
 0x296   : > { %v676_v48 = vsel %vm540_vm1, %v1235_v47, 0.0 }
 0x297   : > { %677 = vadd.xlane.f32.xlu2 %v676_v48  ;;  %v980_v48 = vld [vmem:[%s1665_s9 + $0x48] sm:$0xff] }
 0x298   : > { %v1210_v49 = vpop.permute.xlu0 %1209 }
 0x299   : > { %v1237_v50 = vpop.eup %1236  ;;  %v1212_v51 = vunpack.i.h.bf16 %v1210_v49  ;;  %v1211_v52 = vunpack.i.l.bf16 %v1210_v49  ;;  %v979_v49 = vld [vmem:[%s1665_s9 + $0x40] sm:$0xff] }
 0x29a   : > { %v683_v53 = vmul.f32 %v1237_v50, %v1229_v30 }
 0x29b   : > { %708 = vmatpush.msrb.mxu2 %v1211_v52  ;;  %734 = vmatpush.msra.mxu1 %v1212_v51  ;;  %v978_v51 = vld [vmem:[%s1665_s9 + $0x38] sm:$0xff] }
 0x29c   : > { %1147 = vmatmul.msk.f32.vlgmr.msrb.gmra.mxu2 %vm540_vm1, %v683_v53  ;;  %v977_v53 = vld [vmem:[%s1665_s9 + $0x30] sm:$0xff] }
 0x29d   : > { %812 = vmatpush.msra.mxu2 %v1151_v6  ;;  %v972_v6 = vld [vmem:[%s1665_s9 + $0x8] sm:$0xff] }
 0x2ab   : > { %1214 = vrot.lane.b32.xlu1 %v1213_v54, %s1318_s18  ;;  %s1266_s18 = scalar_lea.hbm %s1265_s29, 8 }
 0x2ac   : > { %p1267_p11 = scmp.ne.s32.totalorder %s1265_s29, %s1266_s18  ;;  %p1272_p1 = scmp.lt.s32.totalorder %s1270_s20, %s1266_s18 }
 0x2ae   : > { %p1268_p12 = pnand %p1267_p11, %p1438_p5  ;;  %p1273_p2 = por %p1272_p1, %p1271_p0 }
 0x2b0   : > { %p1269_p13 = pneg %p1268_p12 }
 0x2b2   : > { %p1274_p3 = pnand %p1273_p2, %p1269_p13 }
 0x2f1   : > { %v672_v55 = vpop.xlane.xlu2 %671 }
 0x2f2   : > { %1238 = vrcp.f32 %v672_v55  ;;  %v976_v55 = vld [vmem:[%s1665_s9 + $0x28] sm:$0xff] }
 0x2f8   : > { %v1239_v56 = vpop.eup %1238 }
 0x2f9   : > { %v684_v57 = vmul.f32 %v1239_v56, %v1231_v36 }
 0x2fb   : > { %1148 = vmatmul.msk.f32.vlgmr.msra.gmra.mxu1 %vm540_vm1, %v684_v57  ;;  %v975_v57 = vld [vmem:[%s1665_s9 + $0x20] sm:$0xff] }
 0x305   : > { %v675_v59 = vpop.xlane.xlu1 %674 }
 0x306   : > { %1240 = vrcp.f32 %v675_v59  ;;  %v974_v59 = vld [vmem:[%s1665_s9 + $0x18] sm:$0xff] }
 0x30a   : > { %v678_v60 = vpop.xlane.xlu2 %677 }
 0x30b   : > { %1242 = vrcp.f32 %v678_v60 }
 0x30c   : > { %v1241_v61 = vpop.eup %1240  ;;  %1244 = vrcp.f32 %v1319_v25 }
 0x30d   : > { %v685_v2 = vmul.f32 %v1241_v61, %v1233_v44  ;;  %v983_v44 = vld [vmem:[%s1665_s9 + $0x60] sm:$0xff] }
 0x30e   : > { %994 = vmatpush.msrb.mxu3 %v983_v44 }
 0x310   : > { %995 = vmatpush.msrb.mxu3 %v982_v46 }
 0x311   : > { %v1243_v62 = vpop.eup %1242 }
 0x312   : > { %v686_v5 = vmul.f32 %v1243_v62, %v1235_v47  ;;  %v1245_v26 = vpop.eup %1244  ;;  %v981_v47 = vld [vmem:[%s1665_s9 + $0x50] sm:$0xff]  ;;  %v1220_v62 = vld [vmem:[%s1661_s5] ss:$0 sm:$0xff] }
 0x313   : > { %v902_v27 = vmul.f32 32.0, %v1245_v26  ;;  %vm906_vm2 = vweird.f32 %v1245_v26  ;;  %996 = vmatpush.msrb.mxu3 %v981_v47 }
 0x315   : > { %v903_v28 = vsub.f32 1.0, %v902_v27  ;;  %997 = vmatpush.msrb.mxu3 %v980_v48 }
 0x317   : > { %v904_v29 = vmul.f32 %v1245_v26, %v903_v28  ;;  %998 = vmatpush.msrb.mxu3 %v979_v49 }
 0x319   : > { %v905_v30 = vadd.f32 %v1245_v26, %v904_v29  ;;  %999 = vmatpush.msrb.mxu3 %v978_v51 }
 0x31b   : > { %v1538_v33 = vsel %vm906_vm2, %v1245_v26, %v905_v30  ;;  %1000 = vmatpush.msrb.mxu3 %v977_v53 }
 0x31d   : > { %v1215_v63 = vpop.permute.xlu1 %1214  ;;  %1001 = vmatpush.msrb.mxu3 %v976_v55 }
 0x31e   : > { %v1217_v0 = vunpack.i.h.bf16 %v1215_v63  ;;  %v1216_v1 = vunpack.i.l.bf16 %v1215_v63 }
 0x31f   : > { %v710_v3 = vpop.f32.mrf.mxu2  ;;  %1002 = vmatpush.msrb.mxu3 %v975_v57 }
 0x320   : > { %760 = vmatpush.msra.mxu0 %v1216_v1  ;;  %786 = vmatpush.msrb.mxu1 %v1217_v0  ;;  %v1221_v1 = vld [vmem:[%s1662_s6] ss:$0 sm:$0xff] }
 0x321   : > { %1153 = vmatmul.msk.f32.vlgmr.msra.gmra.mxu3 %vm540_vm1, %v710_v3  ;;  %1149 = vmatmul.msk.f32.vlgmr.msra.gmra.mxu0 %vm540_vm1, %v685_v2 }
 0x322   : > { %1150 = vmatmul.msk.f32.vlgmr.msrb.gmra.mxu1 %vm540_vm1, %v686_v5  ;;  %860 = vmatpush.msrb.mxu0 %v1154_v8  ;;  %v973_v5 = vld [vmem:[%s1665_s9 + $0x10] sm:$0xff]  ;;  %v1222_v8 = vld [vmem:[%s1664_s8] ss:$0 sm:$0xff] }
 0x323   : > { %886 = vmatpush.msra.mxu1 %v1156_v9  ;;  %1003 = vmatpush.msrb.mxu3 %v974_v59 }
 0x325   : > { %1004 = vmatpush.msrb.mxu3 %v973_v5 }
 0x327   : > { %1005 = vmatpush.msrb.mxu3 %v972_v6 }
 0x378   : > { %v736_v7 = vpop.f32.mrf.mxu1 }
 0x379   : > { %1152 = vmatmul.msk.f32.vlgmr.msra.gmra.mxu2 %vm540_vm1, %v736_v7  ;;  %v971_v7 = vld [vmem:[%s1665_s9] sm:$0xff] }
 0x37a   : > { %1006 = vmatpush.msrb.mxu3 %v971_v7 }
 0x39e   : > { %v762_v10 = vpop.f32.mrf.mxu0 }
 0x39f   : > { %v788_v11 = vpop.f32.mrf.mxu1  ;;  %1155 = vmatmul.msk.f32.vlgmr.msrb.gmra.mxu0 %vm540_vm1, %v762_v10 }
 0x3a0   : > { %1157 = vmatmul.msk.f32.vlgmr.msra.gmra.mxu1 %vm540_vm1, %v788_v11 }
 0x3a4   : > { %v837_v13 = vpop.f32.mrf.mxu3 }
 0x3fc   : > { %v814_v12 = vpop.f32.mrf.mxu2 }
 0x3fd   : > { %v838_v14 = vadd.f32 %v837_v13, %v814_v12  ;;  %v1223_v12 = vld [vmem:[%s1666_s10] ss:$0 sm:$0xff] }
 0x41c   : > { %v862_v15 = vpop.f32.mrf.mxu0 }
 0x41d   : > { %v865_v16 = vadd.f32 %v862_v15, %v838_v14  ;;  %v888_v18 = vpop.f32.mrf.mxu1 }
 0x41f   : > { %v891_v19 = vadd.f32 %v888_v18, %v865_v16 }
 0x421   : > { %v896_v20 = vadd.f32 %v1219_v17, %v891_v19 }
 0x423   : > { %v1522_v21 = vadd.f32 %v896_v20, %v1465_v4  ;;  %v942_v4 = vld [vmem:[%s1663_s7 + $0x18] sm:$0xff] }
 0x424   : > { %962 = vmatpush.msrb.mxu2 %v942_v4 }
 0x425   : > { %v898_v22 = vsel %vm499_vm0, %v1522_v21, 0.0  ;;  %v909_v23 = vmul.f32 %v1522_v21, %v1522_v21 }
 0x426   : > { %899 = vadd.xlane.f32.xlu2 %v898_v22  ;;  %963 = vmatpush.msrb.mxu2 %v941_v31 }
 0x427   : > { %v910_v24 = vsel %vm499_vm0, %v909_v23, 0.0 }
 0x428   : > { %911 = vadd.xlane.f32.xlu0 %v910_v24  ;;  %964 = vmatpush.msrb.mxu2 %v940_v32  ;;  %v1224_v32 = vld [vmem:[%s1667_s11] ss:$0 sm:$0xff] }
 0x42a   : > { %965 = vmatpush.msrb.mxu2 %v939_v34 }
 0x499   : > { %v900_v35 = vpop.xlane.xlu2 %899 }
 0x49a   : > { %v908_v36 = vmul.f32 %v1538_v33, %v900_v35  ;;  %v1225_v35 = vld [vmem:[%s1668_s12] ss:$0 sm:$0xff] }
 0x49b   : > { %v912_v39 = vpop.xlane.xlu0 %911 }
 0x49c   : > { %v914_v40 = vmul.f32 %v908_v36, %v908_v36  ;;  %v913_v41 = vmul.f32 %v912_v39, %v1538_v33  ;;  %v916_v61 = vsub.f32 %v1522_v21, %v908_v36  ;;  %v1227_v39 = vld [vmem:[%s1670_s14] ss:$0 sm:$0xff] }
 0x49e   : > { %v915_v43 = vsub.f32 %v913_v41, %v914_v40 }
 0x4a0   : > { %v917_v45 = vadd.f32 1e-05, %v915_v43 }
 0x4a2   : > { %1246 = vrsqrt.f32 %v917_v45  ;;  %vm924_vm4 = vweird.f32 %v917_v45 }
 0x4a8   : > { %v1247_v50 = vpop.eup %1246 }
 0x4a9   : > { %v919_v52 = vmul.f32 %v1247_v50, %v917_v45  ;;  %vm925_vm3 = vweird.f32 %v1247_v50 }
 0x4aa   : > { %vm926_vm5 = vmor %vm924_vm4, %vm925_vm3 }
 0x4ab   : > { %v920_v54 = vmul.f32 %v1247_v50, %v919_v52 }
 0x4ad   : > { %v921_v56 = vmul.f32 0.5, %v920_v54 }
 0x4af   : > { %v922_v58 = vsub.f32 1.5, %v921_v56 }
 0x4b1   : > { %v923_v60 = vmul.f32 %v1247_v50, %v922_v58 }
 0x4b3   : > { %v927_v63 = vsel %vm926_vm5, %v1247_v50, %v923_v60 }
 0x4b4   : > { %v928_v0 = vmul.f32 %v927_v63, %v916_v61 }
 0x4b6   : > { %v933_v2 = vmul.f32 %v1220_v62, %v928_v0 }
 0x4b8   : > { %v938_v3 = vadd.f32 %v1221_v1, %v933_v2 }
 0x4ba   : > { %1158 = vmatmul.msk.f32.vlgmr.msrb.gmra.mxu2 %vm499_vm0, %v938_v3 }
 0x53d   : > { %v967_v9 = vpop.f32.mrf.mxu2 }
 0x53e   : > { %v968_v10 = vadd.f32 %v1222_v8, %v967_v9 }
 0x540   : > { %v970_v11 = vmax.f32 %v968_v10, 0.0 }
 0x542   : > { %1007 = vmatmul.f32.vlgmr.msrb.gmra.mxu3 %v970_v11 }
 0x5c5   : > { %v1008_v13 = vpop.f32.mrf.mxu3 }
 0x5c6   : > { %v1009_v14 = vadd.f32 %v1223_v12, %v1008_v13 }
 0x5c8   : > { %v1011_v15 = vadd.f32 %v1009_v14, %v938_v3 }
 0x5ca   : > { %v1012_v16 = vsel %vm499_vm0, %v1011_v15, 0.0  ;;  %v1016_v17 = vmul.f32 %v1011_v15, %v1011_v15 }
 0x5cb   : > { %1013 = vadd.xlane.f32.xlu2 %v1012_v16 }
 0x5cc   : > { %v1017_v18 = vsel %vm499_vm0, %v1016_v17, 0.0 }
 0x5d3   : > { %1018 = vadd.xlane.f32.xlu2 %v1017_v18 }
 0x63e   : > { %v1014_v19 = vpop.xlane.xlu2 %1013 }
 0x63f   : > { %v1015_v20 = vmul.f32 %v1014_v19, %v1538_v33 }
 0x641   : > { %v1021_v22 = vmul.f32 %v1015_v20, %v1015_v20  ;;  %v1023_v31 = vsub.f32 %v1011_v15, %v1015_v20 }
 0x646   : > { %v1019_v21 = vpop.xlane.xlu2 %1018 }
 0x647   : > { %v1020_v23 = vmul.f32 %v1019_v21, %v1538_v33 }
 0x649   : > { %v1022_v24 = vsub.f32 %v1020_v23, %v1021_v22 }
 0x64b   : > { %v1024_v25 = vadd.f32 1e-05, %v1022_v24 }
 0x64d   : > { %1248 = vrsqrt.f32 %v1024_v25  ;;  %vm1031_vm7 = vweird.f32 %v1024_v25 }
 0x653   : > { %v1249_v26 = vpop.eup %1248 }
 0x654   : > { %v1026_v27 = vmul.f32 %v1249_v26, %v1024_v25  ;;  %vm1032_vm6 = vweird.f32 %v1249_v26 }
 0x655   : > { %vm1033_vm8 = vmor %vm1031_vm7, %vm1032_vm6 }
 0x656   : > { %v1027_v28 = vmul.f32 %v1249_v26, %v1026_v27 }
 0x658   : > { %v1028_v29 = vmul.f32 0.5, %v1027_v28 }
 0x65a   : > { %v1029_v30 = vsub.f32 1.5, %v1028_v29 }
 0x65c   : > { %v1030_v4 = vmul.f32 %v1249_v26, %v1029_v30 }
 0x65e   : > { %v1034_v33 = vsel %vm1033_vm8, %v1249_v26, %v1030_v4 }
 0x65f   : > { %v1035_v34 = vmul.f32 %v1034_v33, %v1023_v31 }
 0x661   : > { %v1040_v36 = vmul.f32 %v1224_v32, %v1035_v34 }
 0x663   : > { %v1045_v38 = vadd.f32 %v1225_v35, %v1040_v36 }
 0x665   : > { %v1050_v40 = vmul.f32 %v1226_v37, %v1045_v38 }
 0x667   : > { %v1055_v41 = vadd.f32 %v1227_v39, %v1050_v40 }
 0x669   : > { %1056 = vst.msk [vmem:[%s485_s22] sm:$0xff] %vm499_vm0, %v1055_v41 }
 0x66a   : > { %1277 = shalt.err (!%p1274_p3)
}
 0x66b   : > { %1163 = dma.vmem_to_hbm [thread:$0]  (%p1438_p5), %s1071_s1, 128, %s1073_s2, %s1058_s27  }
 0x66c PF: > { %s1690_s16 = sld [smem:[#allocation5_spill]]  ;;  %p1169_p4 = scmp.ge.s32.totalorder %s1312_s21, 2 }
 0x66e   : > { %p1166_p7 = pnand %p1169_p4, %p1442_p6 }
 0x670   : > { %p1167_p8 = pneg %p1166_p7 }
 0x672   : > { %s1084_s17 = sand.u32 1, %s1690_s16  }
 0x673   : > { %s1085_s23 = scalar_lea.sflag [#allocation3], %s1084_s17 }
 0x674   : > { %1295 = dma.done.wait (%p1167_p8), %s1085_s23, 128  }
 0x675   : > { %1297 = vsyncadd (%p1167_p8), %s1085_s23, 4294967168  ;;  %s1692_s21 = sld [smem:[#allocation7_spill]]  ;;  %s1695_s18 = smov %s1304_s19 }
 0x676   : > { %s1693_s22 = sld [smem:[#allocation6_spill]] }
 0x677   : > { %s1694_s20 = sld [smem:[#allocation8_spill]] }
 0x67b   : > { %p25_p9 = scmp.ge.s32.totalorder %s1692_s21, 4  }
 0x67c   : > { %s1696_s19 = smov %s1693_s22 }
 0x67d   :  { %27 = sbr.rel (!%p25_p9) target bundleno = 7 (0x7), region = 118 }
 0x682   :  { %1091 = vsyncpa [#allocation3], 1 }
 0x683   :  { %1093 = vsyncpa [#allocation3 + $0x1], 1 }

</bundles_post_ra>
